<compile_context>
chip_gen: v5e
topology: v5e:2x2
jax: 0.10.0
libtpu: 0.0.40
codegen_flags: <defaults>
</compile_context>

<pallas_src>
import math

import jax
import jax.numpy as jnp
from jax import lax
from jax.experimental import pallas as pl
from jax.experimental.pallas import tpu as pltpu

# Sobel 3x3 kernels (kornia convention) are separable:
#   Kx = [1, 2, 1]^T (rows) x [-1, 0, 1] (cols)
#   Ky = [-1, 0, 1]^T (rows) x [ 1, 2, 1] (cols)
# normalize_kernel2d divides each by sum(|k|) == 8.
_NORM = 8.0
_LANE = 128
_TARGET_BLOCK_BYTES = 2 * 1024 * 1024  # already on the ~85% HBM-roofline plateau


def _is_pow2(n):
    return n > 0 and (n & (n - 1)) == 0


def _round_up(n, m):
    return -(-n // m) * m


def _make_dense_kernel(W, k, Hk, TBF, inv_norm, eps):
    """Sobel body for a (TBF, k*W) block of k-row-folded image rows.

    Layout: image row r (within the stacked planes) lives at folded row r // k,
    lanes [(r % k) * W, (r % k + 1) * W).  Blocks always start at a plane
    boundary and hold whole planes, so every cross-block wrap lands on a
    plane-edge row and is overridden by the replicate selects.  W, k and Hk are
    powers of two, so all masks are iota + bitwise ops (no vector div/mod).
    pltpu.roll follows np.roll semantics: roll(x, s, a)[i] == x[(i - s) % n].
    """
    Wf = k * W

    def kern(x_ref, o_ref):
        x = x_ref[...]                                        # (TBF, Wf) f32

        # ---- masks: computed once at full block shape, all bitwise ----
        c = lax.broadcasted_iota(jnp.int32, (TBF, Wf), 1)     # lane index
        fl = lax.broadcasted_iota(jnp.int32, (TBF, Wf), 0)    # folded row in block
        flq = jnp.bitwise_and(fl, Hk - 1)                     # folded row in plane
        if k > 1:
            j = jnp.bitwise_and(c, W - 1)                     # column within segment
            col_first = j == 0
            col_last = j == W - 1
            seg_first = c < W                                 # segment 0
            seg_last = c >= Wf - W                            # segment k-1
            row_first = jnp.logical_and(flq == 0, seg_first)  # image row 0 of plane
            row_last = jnp.logical_and(flq == Hk - 1, seg_last)  # image row H-1
        else:
            col_first = c == 0
            col_last = c == W - 1
            row_first = flq == 0
            row_last = flq == Hk - 1

        # ---- horizontal taps (replicate at image columns 0 / W-1) ----
        left = jnp.where(col_first, x, pltpu.roll(x, 1, 1))        # x[r, j-1]
        right = jnp.where(col_last, x, pltpu.roll(x, Wf - 1, 1))   # x[r, j+1]
        d = right - left                   # [-1, 0, 1] tap along x
        s = left + 2.0 * x + right         # [ 1, 2, 1] tap along x

        # ---- vertical taps: previous/next image row, replicate at 0 / H-1 ----
        if k > 1:
            def prev_row(q):               # value of q at image row r-1
                ql = pltpu.roll(q, W, 1)           # same folded row, segment-1
                qd = pltpu.roll(ql, 1, 0)          # previous folded row, segment k-1
                return jnp.where(row_first, q, jnp.where(seg_first, qd, ql))

            def next_row(q):               # value of q at image row r+1
                ql = pltpu.roll(q, Wf - W, 1)      # same folded row, segment+1
                qd = pltpu.roll(ql, TBF - 1, 0)    # next folded row, segment 0
                return jnp.where(row_last, q, jnp.where(seg_last, qd, ql))
        else:
            def prev_row(q):
                return jnp.where(row_first, q, pltpu.roll(q, 1, 0))

            def next_row(q):
                return jnp.where(row_last, q, pltpu.roll(q, TBF - 1, 0))

        gx = (prev_row(d) + 2.0 * d + next_row(d)) * inv_norm
        gy = (next_row(s) - prev_row(s)) * inv_norm
        o_ref[...] = jnp.sqrt(gx * gx + gy * gy + eps).astype(o_ref.dtype)

    return kern


def _make_planes_kernel(H, W, inv_norm, eps):
    """General fallback: (tb, H, W) blocks of whole planes, no lane folding.

    Used when H is not a power of two.  Row/column masks are plain iota
    comparisons on the plane axes, so any H/W works without vector div/mod.
    TODO(synk): lane-fold W < 128 here too (needs mod-free per-plane row masks
    for arbitrary H); lanes are padded to 128 for small W on this path.
    """

    def kern(x_ref, o_ref):
        x = x_ref[...]                                   # (tb, H, W) f32
        shp = x.shape
        col = lax.broadcasted_iota(jnp.int32, shp, 2)
        row = lax.broadcasted_iota(jnp.int32, shp, 1)
        col_first = col == 0
        col_last = col == W - 1
        row_first = row == 0
        row_last = row == H - 1

        left = jnp.where(col_first, x, pltpu.roll(x, 1, 2))
        right = jnp.where(col_last, x, pltpu.roll(x, W - 1, 2))
        d = right - left
        s = left + 2.0 * x + right

        d_up = jnp.where(row_first, d, pltpu.roll(d, 1, 1))
        d_dn = jnp.where(row_last, d, pltpu.roll(d, H - 1, 1))
        s_up = jnp.where(row_first, s, pltpu.roll(s, 1, 1))
        s_dn = jnp.where(row_last, s, pltpu.roll(s, H - 1, 1))

        gx = (d_up + 2.0 * d + d_dn) * inv_norm
        gy = (s_dn - s_up) * inv_norm
        o_ref[...] = jnp.sqrt(gx * gx + gy * gy + eps).astype(o_ref.dtype)

    return kern


def sobel_pallas(x, normalized=True, eps=1e-06, *, out_dtype=None,
                 target_block_bytes=_TARGET_BLOCK_BYTES):
    """x: (B, C, H, W) -> per-channel Sobel gradient magnitude, same shape."""
    if x.ndim != 4:
        raise ValueError(f"Invalid input shape, we expect BxCxHxW. Got: {x.shape}")

    B, C, H, W = x.shape
    BC = B * C
    out_dtype = jnp.dtype(x.dtype if out_dtype is None else out_dtype)
    xf32 = x.astype(jnp.float32)          # compute is always f32

    inv_norm = (1.0 / _NORM) if normalized else 1.0
    eps = float(eps)

    # Sublane granularity the blocks must respect (8 for 32-bit, 16 for 16-bit
    # outputs, ...) unless a block spans the full sublane extent.
    subm = max(8, 32 // out_dtype.itemsize)

    if _is_pow2(H):
        # ---- dense 2-D path: fold k image rows onto the 128-lane axis ----
        if W < _LANE and _LANE % W == 0:
            k = min(_LANE // W, H)        # both powers of two, k | H
        else:
            k = 1
        Hk = H // k                       # folded rows per plane (power of two)
        Wf = k * W
        Rf = BC * Hk
        padded_wf = _round_up(Wf, _LANE)

        plane_bytes = Hk * padded_wf * 4
        tb = max(1, target_block_bytes // plane_bytes)   # planes per grid step
        tb = min(tb, max(1, BC // 8))     # keep ~8 grid steps: overlap + megacore
        g = subm // math.gcd(Hk, subm)    # sublane-legal granularity (in planes)
        tb = max(g, (tb // g) * g)
        if tb >= BC:
            tb = BC                       # full-extent block is always legal
        TBF = tb * Hk
        grid = (pl.cdiv(BC, tb),)

        kern = _make_dense_kernel(W, k, Hk, TBF, inv_norm, eps)
        xr = xf32.reshape(Rf, Wf)         # free row-major collapse, no HBM copy
        in_specs = [pl.BlockSpec((TBF, Wf), lambda i: (i, 0))]
        out_specs = pl.BlockSpec((TBF, Wf), lambda i: (i, 0))
        out_shape = jax.ShapeDtypeStruct((Rf, Wf), out_dtype)
        block_in = TBF * padded_wf * 4
        block_out = TBF * padded_wf * out_dtype.itemsize
    else:
        # ---- general fallback: whole (H, W) planes, rank-3 blocks ----
        plane_bytes = _round_up(H, 8) * _round_up(W, _LANE) * 4
        tb = max(1, target_block_bytes // plane_bytes)
        tb = min(tb, max(1, BC // 8))
        tb = min(tb, BC)
        grid = (pl.cdiv(BC, tb),)

        kern = _make_planes_kernel(H, W, inv_norm, eps)
        xr = xf32.reshape(BC, H, W)
        in_specs = [pl.BlockSpec((tb, H, W), lambda i: (i, 0, 0))]
        out_specs = pl.BlockSpec((tb, H, W), lambda i: (i, 0, 0))
        out_shape = jax.ShapeDtypeStruct((BC, H, W), out_dtype)
        block_in = tb * plane_bytes
        block_out = tb * _round_up(H, subm) * _round_up(W, _LANE) * out_dtype.itemsize

    # Double-buffered in + out blocks plus slack for compiler scratch; clamped
    # to stay well inside v7x's 64 MiB physical VMEM (v5e/v6e have 128 MiB).
    vmem_limit = 2 * (block_in + block_out) + (8 << 20)
    vmem_limit = int(min(max(vmem_limit, 16 << 20), 48 << 20))

    out = pl.pallas_call(
        kern,
        out_shape=out_shape,
        grid_spec=pltpu.PrefetchScalarGridSpec(
            num_scalar_prefetch=0,
            grid=grid,
            in_specs=in_specs,
            out_specs=out_specs,
        ),
        compiler_params=pltpu.CompilerParams(
            # Grid steps are independent plane groups.
            dimension_semantics=("parallel",),
            vmem_limit_bytes=vmem_limit,
        ),
    )(xr)

    return out.reshape(B, C, H, W)


def _sobel_ref_jax(x, normalized=True, eps=1e-06):
    """Pure-JAX reference mirroring the PyTorch/kornia code."""
    B, C, H, W = x.shape
    norm = _NORM if normalized else 1.0
    kx = jnp.array([[-1., 0., 1.], [-2., 0., 2.], [-1., 0., 1.]], jnp.float32) / norm
    ky = jnp.array([[-1., -2., -1.], [0., 0., 0.], [1., 2., 1.]], jnp.float32) / norm
    xf = x.reshape(B * C, H, W).astype(jnp.float32)
    xpad = jnp.pad(xf, ((0, 0), (1, 1), (1, 1)), mode="edge")
    gx = jnp.zeros_like(xf)
    gy = jnp.zeros_like(xf)
    for di in range(3):
        for dj in range(3):
            win = xpad[:, di:di + H, dj:dj + W]
            gx = gx + kx[di, dj] * win
            gy = gy + ky[di, dj] * win
    return jnp.sqrt(gx * gx + gy * gy + eps).reshape(B, C, H, W)


if __name__ == "__main__":
    key = jax.random.PRNGKey(0)
    B, C, H, W = 2, 4, 16, 16
    x = jax.random.normal(key, (B, C, H, W), dtype=jnp.float32)

    out = jax.block_until_ready(sobel_pallas(x, normalized=True, eps=1e-06))
    ref = _sobel_ref_jax(x, normalized=True, eps=1e-06)
    assert out.shape == (B, C, H, W)
    assert out.dtype == x.dtype
    assert jnp.allclose(out, ref, atol=1e-5, rtol=1e-5), "mismatch vs reference"

    # Non-divisible plane count (BC=6, block of 4 planes): exercises the
    # masked out-of-range reads/writes of the trailing partial block.
    x2 = jax.random.normal(jax.random.PRNGKey(1), (2, 3, 16, 16), dtype=jnp.float32)
    out2 = jax.block_until_ready(sobel_pallas(x2))
    assert jnp.allclose(out2, _sobel_ref_jax(x2), atol=1e-5, rtol=1e-5), \
        "mismatch vs reference (partial trailing block)"

    print("KERNEL_OK")
</pallas_src>

<mosaic_0001>
module attributes {stable_mosaic.version = 11 : i64} {
  func.func @kern(%arg0: i32, %arg1: memref<8x128xf32, #tpu.memory_space<vmem>>, %arg2: memref<8x128xf32, #tpu.memory_space<vmem>>) attributes {dimension_semantics = [#tpu.dimension_semantics<parallel>], iteration_bounds = array<i64: 2>, scalar_prefetch = 0 : i64, scratch_operands = 0 : i64, tpu.core_type = #tpu.core_type<tc>, window_params = [{transform_indices = @transform_0, window_bounds = array<i64: 8, 128>}, {transform_indices = @transform_1, window_bounds = array<i64: 8, 128>}]} {
    %c0 = arith.constant 0 : index
    %c0_0 = arith.constant 0 : index
    %0 = vector.load %arg1[%c0, %c0_0] : memref<8x128xf32, #tpu.memory_space<vmem>>, vector<8x128xf32>
    %1 = tpu.iota {dimensions = array<i32: 1>} : vector<8x128xi32>
    %2 = tpu.iota {dimensions = array<i32: 0>} : vector<8x128xi32>
    %c1_i32 = arith.constant 1 : i32
    %3 = vector.broadcast %c1_i32 : i32 to vector<8x128xi32>
    %4 = arith.andi %2, %3 : vector<8x128xi32>
    %c15_i32 = arith.constant 15 : i32
    %5 = vector.broadcast %c15_i32 : i32 to vector<8x128xi32>
    %6 = arith.andi %1, %5 : vector<8x128xi32>
    %c0_i32 = arith.constant 0 : i32
    %7 = vector.broadcast %c0_i32 : i32 to vector<8x128xi32>
    %8 = arith.cmpi eq, %6, %7 : vector<8x128xi32>
    %c15_i32_1 = arith.constant 15 : i32
    %9 = vector.broadcast %c15_i32_1 : i32 to vector<8x128xi32>
    %10 = arith.cmpi eq, %6, %9 : vector<8x128xi32>
    %c16_i32 = arith.constant 16 : i32
    %11 = vector.broadcast %c16_i32 : i32 to vector<8x128xi32>
    %12 = arith.cmpi slt, %1, %11 : vector<8x128xi32>
    %c112_i32 = arith.constant 112 : i32
    %13 = vector.broadcast %c112_i32 : i32 to vector<8x128xi32>
    %14 = arith.cmpi sge, %1, %13 : vector<8x128xi32>
    %c0_i32_2 = arith.constant 0 : i32
    %15 = vector.broadcast %c0_i32_2 : i32 to vector<8x128xi32>
    %16 = arith.cmpi eq, %4, %15 : vector<8x128xi32>
    %17 = arith.andi %16, %12 : vector<8x128xi1>
    %c1_i32_3 = arith.constant 1 : i32
    %18 = vector.broadcast %c1_i32_3 : i32 to vector<8x128xi32>
    %19 = arith.cmpi eq, %4, %18 : vector<8x128xi32>
    %20 = arith.andi %19, %14 : vector<8x128xi1>
    %c1_i32_4 = arith.constant 1 : i32
    %21 = tpu.dynamic_rotate %0 by %c1_i32_4 dim 1 : vector<8x128xf32>, i32 -> vector<8x128xf32>
    %22 = arith.select %8, %0, %21 : vector<8x128xi1>, vector<8x128xf32>
    %c127_i32 = arith.constant 127 : i32
    %23 = tpu.dynamic_rotate %0 by %c127_i32 dim 1 : vector<8x128xf32>, i32 -> vector<8x128xf32>
    %24 = arith.select %10, %0, %23 : vector<8x128xi1>, vector<8x128xf32>
    %25 = arith.subf %24, %22 : vector<8x128xf32>
    %cst = arith.constant 2.000000e+00 : f32
    %26 = vector.broadcast %cst : f32 to vector<8x128xf32>
    %27 = arith.mulf %26, %0 : vector<8x128xf32>
    %28 = arith.addf %22, %27 : vector<8x128xf32>
    %29 = arith.addf %28, %24 : vector<8x128xf32>
    %c16_i32_5 = arith.constant 16 : i32
    %30 = tpu.dynamic_rotate %25 by %c16_i32_5 dim 1 : vector<8x128xf32>, i32 -> vector<8x128xf32>
    %c1_i32_6 = arith.constant 1 : i32
    %31 = tpu.dynamic_rotate %30 by %c1_i32_6 dim 0 : vector<8x128xf32>, i32 -> vector<8x128xf32>
    %32 = arith.select %12, %31, %30 : vector<8x128xi1>, vector<8x128xf32>
    %33 = arith.select %17, %25, %32 : vector<8x128xi1>, vector<8x128xf32>
    %cst_7 = arith.constant 2.000000e+00 : f32
    %34 = vector.broadcast %cst_7 : f32 to vector<8x128xf32>
    %35 = arith.mulf %34, %25 : vector<8x128xf32>
    %36 = arith.addf %33, %35 : vector<8x128xf32>
    %c112_i32_8 = arith.constant 112 : i32
    %37 = tpu.dynamic_rotate %25 by %c112_i32_8 dim 1 : vector<8x128xf32>, i32 -> vector<8x128xf32>
    %c7_i32 = arith.constant 7 : i32
    %38 = tpu.dynamic_rotate %37 by %c7_i32 dim 0 : vector<8x128xf32>, i32 -> vector<8x128xf32>
    %39 = arith.select %14, %38, %37 : vector<8x128xi1>, vector<8x128xf32>
    %40 = arith.select %20, %25, %39 : vector<8x128xi1>, vector<8x128xf32>
    %41 = arith.addf %36, %40 : vector<8x128xf32>
    %cst_9 = arith.constant 1.250000e-01 : f32
    %42 = vector.broadcast %cst_9 : f32 to vector<8x128xf32>
    %43 = arith.mulf %41, %42 : vector<8x128xf32>
    %c112_i32_10 = arith.constant 112 : i32
    %44 = tpu.dynamic_rotate %29 by %c112_i32_10 dim 1 : vector<8x128xf32>, i32 -> vector<8x128xf32>
    %c7_i32_11 = arith.constant 7 : i32
    %45 = tpu.dynamic_rotate %44 by %c7_i32_11 dim 0 : vector<8x128xf32>, i32 -> vector<8x128xf32>
    %46 = arith.select %14, %45, %44 : vector<8x128xi1>, vector<8x128xf32>
    %47 = arith.select %20, %29, %46 : vector<8x128xi1>, vector<8x128xf32>
    %c16_i32_12 = arith.constant 16 : i32
    %48 = tpu.dynamic_rotate %29 by %c16_i32_12 dim 1 : vector<8x128xf32>, i32 -> vector<8x128xf32>
    %c1_i32_13 = arith.constant 1 : i32
    %49 = tpu.dynamic_rotate %48 by %c1_i32_13 dim 0 : vector<8x128xf32>, i32 -> vector<8x128xf32>
    %50 = arith.select %12, %49, %48 : vector<8x128xi1>, vector<8x128xf32>
    %51 = arith.select %17, %29, %50 : vector<8x128xi1>, vector<8x128xf32>
    %52 = arith.subf %47, %51 : vector<8x128xf32>
    %cst_14 = arith.constant 1.250000e-01 : f32
    %53 = vector.broadcast %cst_14 : f32 to vector<8x128xf32>
    %54 = arith.mulf %52, %53 : vector<8x128xf32>
    %55 = arith.mulf %43, %43 : vector<8x128xf32>
    %56 = arith.mulf %54, %54 : vector<8x128xf32>
    %57 = arith.addf %55, %56 : vector<8x128xf32>
    %cst_15 = arith.constant 9.99999997E-7 : f32
    %58 = vector.broadcast %cst_15 : f32 to vector<8x128xf32>
    %59 = arith.addf %57, %58 : vector<8x128xf32>
    %60 = math.sqrt %59 : vector<8x128xf32>
    %c0_16 = arith.constant 0 : index
    %c0_17 = arith.constant 0 : index
    %61 = vector.load %arg2[%c0_16, %c0_17] : memref<8x128xf32, #tpu.memory_space<vmem>>, vector<8x128xf32>
    tpu.vector_store %arg2[%c0_16, %c0_17], %60 {strides = array<i32>} : memref<8x128xf32, #tpu.memory_space<vmem>>, vector<8x128xf32>,
    return
  }
  func.func @transform_0(%arg0: i32) -> (i32, i32) {
    %c0_i32 = arith.constant 0 : i32
    %c0_i32_0 = arith.constant 0 : i32
    return %arg0, %c0_i32 : i32, i32
  }
  func.func @transform_1(%arg0: i32) -> (i32, i32) {
    %c0_i32 = arith.constant 0 : i32
    %c0_i32_0 = arith.constant 0 : i32
    return %arg0, %c0_i32 : i32, i32
  }
}

</mosaic_0001>

<bundles_post_ra>
// kernel: tpu_custom_call.1
= control target key start
LH: loop header
LB: loop body
LE: loop exit
PB: predicated region body
PF: predicated region fallthrough
CT: control target
= control target key end

     0   :  { %6 = vsyncpa [#allocation3], 0  ;;  %s595_s0 = inlined_call_operand.hbm [shape: f32[16,128], index: 0, kind: input, shape index: {}]   ;;  %s596_s1 = inlined_call_operand.hbm [shape: f32[16,128], index: 1, kind: output, shape index: {}]  }
   0x1   :  { %8 = vsyncpa [#allocation3 + $0x1], 0 }
   0x2   :  { %9 = vsyncpa [#allocation4], 0 }
   0x3   :  { %11 = vsyncpa [#allocation4 + $0x1], 0  ;;  %s464_s6 = smov 0   ;;  %s466_s7 = smov 0  }
   0x4   :  { %s468_s8 = smov 0   ;;  %s470_s9 = smov 0  }
   0x5 LB: > { %s485_s10 = sadd.s32 4294967295, %s448_s9   ;;  %s288_s11 = sadd.s32 4294967294, %s448_s9   ;;  %s448_s9 = sphi %s470_s9, %s606_s9   ;;  %s444_s8 = sphi %s468_s8, %s605_s8   ;;  %s440_s7 = sphi %s466_s7, %s604_s7   ;;  %s436_s6 = sphi %s464_s6, %s603_s6  }
   0x6   : > { %s489_s12 = sadd.s32 1, %s448_s9   ;;  %s24_s13 = sadd.s32 1, %s444_s8 }
   0x7   : > { %s21_s14 = ssub.s32 %s448_s9, %s489_s12  ;;  %p31_p0 = scmp.ne.s32.totalorder %s444_s8, %s440_s7 }
   0x8   : > { %p22_p1 = scmp.eq.s32.totalorder %s21_s14, 0  ;;  %p32_p2 = scmp.eq.s32.totalorder %s448_s9, 0 }
   0x9   : > { %p37_p3 = scmp.ne.s32.totalorder %s440_s7, %s436_s6  ;;  %p38_p4 = scmp.eq.s32.totalorder %s485_s10, 0 }
   0xa   : > { %s501_s15 = scalar_select %p22_p1, %s444_s8, %s24_s13  }
   0xb   : > { %p503_p5 = por %p32_p2, %p31_p0  ;;  %p507_p6 = por %p38_p4, %p37_p3 }
   0xc   : > { %p61_p7 = scmp.eq.s32.totalorder %s485_s10, 1  ;;  %p67_p8 = scmp.eq.s32.totalorder %s288_s11, 1 }
   0xd   : > { %p312_p10 = scmp.lt.s32.totalorder %s448_s9, 2  ;;  %s87_s20 = sand.u32 1, %s444_s8  }
   0xe   : > { %p514_p11 = por %p61_p7, %p31_p0  ;;  %p518_p12 = por %p67_p8, %p37_p3 }
   0xf   : > { %s292_s21 = sshll.u32 %s448_s9, 3  ;;  %s291_s22 = sshll.u32 %s87_s20, 3 }
  0x10   : > { %s95_s25 = scalar_lea.hbm %s595_s0, %s292_s21  ;;  %s91_s27 = scalar_lea.vmem [#allocation2], %s291_s22 }
  0x11   : > { %s97_s26 = sshll.u32 %s95_s25, 4  ;;  %s99_s28 = sshll.u32 %s91_s27, 4  ;;  %s98_s26 = int_to_ptr.hbm [resolvable:$true] %s97_s26  ;;  %s100_s28 = int_to_ptr.vmem [resolvable:$true] %s99_s28 }
  0x12   : > { %p529_p13 = pnand %p312_p10, %p503_p5  ;;  %p293_p0 = scmp.ge.s32.totalorder %s448_s9, 1 }
  0x13   : > { %p104_p1 = scmp.lt.s32.totalorder %s448_s9, 3  ;;  %s88_s30 = scalar_lea.sflag [#allocation3], %s87_s20 }
  0x14   : > { %s352_s2 = sshra.s32 %s98_s26, 4  ;;  %p356_p3 = pneg %p529_p13  ;;  %s353_s2 = int_to_ptr.hbm [resolvable:$true] %s352_s2 }
  0x15   : > { %s354_s3 = scalar_lea.hbm %s353_s2, 8  ;;  %s359_s11 = scalar_lea.hbm %s595_s0, 16 }
  0x16   : > { %p355_p2 = scmp.ne.s32.totalorder %s353_s2, %s354_s3  ;;  %p360_p5 = scmp.lt.s32.totalorder %s353_s2, %s595_s0 }
  0x17   : > { %p361_p8 = scmp.lt.s32.totalorder %s359_s11, %s354_s3 }
  0x18   : > { %p357_p4 = pnand %p356_p3, %p355_p2 }
  0x19   : > { %p362_p10 = por %p361_p8, %p360_p5 }
  0x1a   : > { %p358_p7 = pneg %p357_p4 }
  0x1c   : > { %p363_p9 = pnand %p362_p10, %p358_p7 }
  0x1e   : > { %366 = shalt.err (!%p363_p9)
}
  0x1f   : > { %307 = dma.hbm_to_vmem [thread:$0]  (!%p529_p13), %s98_s26, 128, %s100_s28, %s88_s30  }
  0x20   : > { %p105_p2 = pnand %p293_p0, %p104_p1 }
  0x21   : > { %s550_s16 = sand.u32 (!%p105_p2), 1, %s440_s7  }
  0x22   : > { %108 = sbr.rel (%p105_p2) target bundleno = 328 (0x148), region = 24  ;;  %s294_s20 = sshll.u32 (!%p105_p2), %s550_s16, 3 }
  0x23   : > { %s111_s21 = scalar_lea.sflag (!%p105_p2), [#allocation3], %s550_s16  ;;  %s114_s22 = scalar_lea.vmem (!%p105_p2), [#allocation2], %s294_s20 }
  0x27   : > { %427 = dma.done.wait (%p507_p6), %s111_s21, 128  }
  0x28   : > { %429 = vsyncadd (%p507_p6), %s111_s21, 4294967168  ;;  %v134_v0 = vld [vmem:[%s114_s22] sm:$0xff]  ;;  %s450_s23 = smov 1   ;;  %s451_s24 = smov 127   ;;  %v135_v1 = vlaneseq }
  0x29   : > { %149 = vrot.lane.b32.xlu0 %v134_v0, %s450_s23  ;;  %v156_v5 = vmul.f32 2.0, %v134_v0  ;;  %s452_s17 = smov 16   ;;  %s453_s25 = smov 112  }
  0x2a   : > { %v136_v2 = vand.u32 127, %v135_v1  ;;  %v138_v13 = vshrl.u32 %v135_v1, 7  ;;  %s297_s26 = sshll.u32 %s485_s10, 3  ;;  %s133_s30 = scalar_lea.vmem [#allocation5], %s294_s20 }
  0x2b   : > { %s213_s29 = scalar_lea.hbm %s596_s1, %s297_s26  ;;  %s215_s2 = sshll.u32 %s133_s30, 4  ;;  %s216_s2 = int_to_ptr.vmem [resolvable:$true] %s215_s2 }
  0x2c   : > { %v140_v3 = vand.u32 15, %v136_v2  ;;  %v139_v15 = vand.u32 1, %v138_v13  ;;  %vm143_vm2 = vcmp.lt.s32.totalorder %v136_v2, 16  ;;  %vm144_vm4 = vcmp.ge.s32.totalorder %v136_v2, 112  ;;  %s217_s3 = sshll.u32 %s213_s29, 4  ;;  %s203_s10 = scalar_lea.sflag [#allocation4], %s550_s16  ;;  %s218_s3 = int_to_ptr.hbm [resolvable:$true] %s217_s3 }
  0x2d   : > { %s396_s4 = sshra.s32 %s218_s3, 4  ;;  %s402_s14 = scalar_lea.hbm %s596_s1, 16  ;;  %s397_s4 = int_to_ptr.hbm [resolvable:$true] %s396_s4 }
  0x2e   : > { %vm141_vm0 = vcmp.eq.s32.totalorder %v140_v3, 0  ;;  %vm142_vm1 = vcmp.eq.s32.totalorder %v140_v3, 15  ;;  %vm145_vm3 = vcmp.eq.s32.totalorder %v139_v15, 0  ;;  %vm147_vm5 = vcmp.eq.s32.totalorder %v139_v15, 1  ;;  %s398_s5 = scalar_lea.hbm %s397_s4, 8  ;;  %p403_p0 = scmp.lt.s32.totalorder %s397_s4, %s596_s1 }
  0x2f   : > { %vm146_vm6 = vmand %vm145_vm3, %vm143_vm2  ;;  %p399_p6 = scmp.ne.s32.totalorder %s397_s4, %s398_s5  ;;  %p404_p1 = scmp.lt.s32.totalorder %s402_s14, %s398_s5 }
  0x30   : > { %vm148_vm7 = vmand %vm147_vm5, %vm144_vm4 }
  0x31   : > { %152 = vrot.lane.b32.xlu0 %v134_v0, %s451_s24  ;;  %p400_p9 = pnand %p399_p6, %p514_p11  ;;  %p405_p3 = por %p404_p1, %p403_p0 }
  0x33   : > { %p401_p13 = pneg %p400_p9 }
  0x35   : > { %p406_p4 = pnand %p405_p3, %p401_p13 }
  0x9b   : > { %v150_v4 = vpop.permute.xlu0 %149 }
  0x9c   : > { %v151_v6 = vsel %vm141_vm0, %v134_v0, %v150_v4 }
  0x9d   : > { %v157_v7 = vadd.f32 %v156_v5, %v151_v6 }
  0xa3   : > { %v153_v8 = vpop.permute.xlu0 %152 }
  0xa4   : > { %v154_v9 = vsel %vm142_vm1, %v134_v0, %v153_v8 }
  0xa5   : > { %v155_v10 = vsub.f32 %v154_v9, %v151_v6  ;;  %v158_v11 = vadd.f32 %v157_v7, %v154_v9 }
  0xa7   : > { %159 = vrot.lane.b32.xlu1 %v155_v10, %s452_s17  ;;  %173 = vrot.lane.b32.xlu2 %v158_v11, %s453_s25  ;;  %v164_v28 = vmul.f32 2.0, %v155_v10 }
  0xaf   : > { %166 = vrot.lane.b32.xlu1 %v155_v10, %s453_s25  ;;  %178 = vrot.lane.b32.xlu2 %v158_v11, %s452_s17 }
 0x101   : > { %v174_v12 = vpop.permute.xlu2 %173 }
 0x102   : > { %v175_v18 = vrot.slane %v174_v12, 1 }
 0x104   : > { %v176_v21 = vsel %vm144_vm4, %v175_v18, %v174_v12 }
 0x105   : > { %v177_v24 = vsel %vm148_vm7, %v158_v11, %v176_v21 }
 0x109   : > { %v179_v14 = vpop.permute.xlu2 %178 }
 0x10a   : > { %v180_v16 = vrot.slane %v179_v14, 7 }
 0x10c   : > { %v181_v20 = vsel %vm143_vm2, %v180_v16, %v179_v14 }
 0x10d   : > { %v182_v23 = vsel %vm146_vm6, %v158_v11, %v181_v20 }
 0x10e   : > { %v183_v27 = vsub.f32 %v177_v24, %v182_v23 }
 0x110   : > { %v184_v33 = vmul.f32 0.125, %v183_v27 }
 0x112   : > { %v186_v36 = vmul.f32 %v184_v33, %v184_v33 }
 0x119   : > { %v160_v17 = vpop.permute.xlu1 %159 }
 0x11a   : > { %v161_v19 = vrot.slane %v160_v17, 7 }
 0x11c   : > { %v162_v22 = vsel %vm143_vm2, %v161_v19, %v160_v17 }
 0x11d   : > { %v163_v25 = vsel %vm146_vm6, %v155_v10, %v162_v22 }
 0x11e   : > { %v165_v30 = vadd.f32 %v164_v28, %v163_v25 }
 0x121   : > { %v167_v26 = vpop.permute.xlu1 %166 }
 0x122   : > { %v168_v29 = vrot.slane %v167_v26, 1 }
 0x124   : > { %v169_v31 = vsel %vm144_vm4, %v168_v29, %v167_v26 }
 0x125   : > { %v170_v32 = vsel %vm148_vm7, %v155_v10, %v169_v31 }
 0x126   : > { %v171_v34 = vadd.f32 %v170_v32, %v165_v30 }
 0x128   : > { %v172_v35 = vmul.f32 0.125, %v171_v34 }
 0x12a   : > { %v185_v37 = vmul.f32 %v172_v35, %v172_v35 }
 0x12c   : > { %v187_v38 = vadd.f32 %v186_v36, %v185_v37 }
 0x12e   : > { %v188_v39 = vadd.f32 1e-06, %v187_v38 }
 0x130   : > { %350 = vrsqrt.f32 %v188_v39  ;;  %vm196_vm8 = vcmp.eq.f32.partialorder %v188_v39, inf  ;;  %v199_v47 = vand.u32 2147483648, %v188_v39  ;;  %vm198_vm9 = vcmp.eq.f32.partialorder %v188_v39, 0.0 }
 0x136   : > { %v351_v40 = vpop.eup %350 }
 0x137   : > { %v190_v41 = vmul.f32 %v351_v40, %v188_v39 }
 0x139   : > { %v191_v42 = vmul.f32 %v351_v40, %v190_v41 }
 0x13b   : > { %v192_v43 = vmul.f32 0.5, %v191_v42 }
 0x13d   : > { %v193_v44 = vsub.f32 1.5, %v192_v43 }
 0x13f   : > { %v194_v45 = vmul.f32 %v351_v40, %v193_v44 }
 0x141   : > { %v195_v46 = vmul.f32 %v194_v45, %v188_v39 }
 0x143   : > { %v197_v48 = vsel %vm196_vm8, %v188_v39, %v195_v46 }
 0x144   : > { %v200_v49 = vsel %vm198_vm9, %v199_v47, %v197_v48 }
 0x145   : > { %201 = vst [vmem:[%s133_s30] sm:$0xff] %v200_v49 }
 0x146   : > { %409 = shalt.err (!%p406_p4)
}
 0x147   : > { %302 = dma.vmem_to_hbm [thread:$0]  (%p514_p11), %s216_s2, 128, %s218_s3, %s203_s10  }
 0x148 PF: > { %s229_s16 = sand.u32 1, %s436_s6   ;;  %p602_p7 = scmp.ge.s32.totalorder %s448_s9, 2 }
 0x149   : > { %s230_s22 = scalar_lea.sflag [#allocation4], %s229_s16 }
 0x14a   : > { %p309_p5 = pnand %p602_p7, %p518_p12 }
 0x14c   : > { %p310_p8 = pneg %p309_p5 }
 0x14e   : > { %431 = dma.done.wait (%p310_p8), %s230_s22, 128  }
 0x14f   : > { %433 = vsyncadd (%p310_p8), %s230_s22, 4294967168  ;;  %p14_p10 = scmp.ge.s32.totalorder %s489_s12, 4   ;;  %s603_s6 = smov %s440_s7 }
 0x150   : > { %s604_s7 = smov %s444_s8  ;;  %s605_s8 = smov %s501_s15 }
 0x151   : > { %s606_s9 = smov %s489_s12  ;;  %16 = sbr.rel (!%p14_p10) target bundleno = 5 (0x5), region = 69 }
 0x156   :  { %236 = vsyncpa [#allocation3], 1 }
 0x157   :  { %238 = vsyncpa [#allocation3 + $0x1], 1 }
 0x158   :  { %239 = vsyncpa [#allocation4], 1 }
 0x159   :  { %241 = vsyncpa [#allocation4 + $0x1], 1 }

</bundles_post_ra>
